<compile_context>
chip_gen: v6e
topology: v6e:2x2x1
jax: 0.10.0
libtpu: 0.0.40
codegen_flags: <defaults>
</compile_context>

<pallas_src>
import math
import functools

import jax
import jax.numpy as jnp
from jax.experimental import pallas as pl
from jax.experimental.pallas import tpu as pltpu


def gpt_block_kernel(
    xq_ref, xs_ref,
    wq_ref, bq_ref,
    wk_ref, bk_ref,
    wv_ref, bv_ref,
    wo_ref, bo_ref,
    w1_ref, b1_ref,
    w2_ref, b2_ref,
    g1_ref, be1_ref,
    g2_ref, be2_ref,
    out_ref,
    *, num_heads, q_tile, eps,
):
    f32 = jnp.float32
    bf16 = jnp.bfloat16

    xq = xq_ref[0]                 # (tq, D) f32 — query-row tile (also the residual)
    xs = xs_ref[0]                 # (S,  D) f32 — full sequence (source of K/V)
    tq, D = xq.shape
    S = xs.shape[0]
    nh = num_heads

    xq_b = jnp.broadcast_to(xq.astype(bf16), (nh, tq, D))
    xs_b = jnp.broadcast_to(xs.astype(bf16), (nh, S, D))

    # --- per-head Q/K/V projections: one batched bf16 matmul each, f32 acc ---
    # (1/sqrt(head_dim) is already folded into wq / bq host-side.)
    q = jnp.einsum('hsd,hde->hse', xq_b, wq_ref[...],
                   preferred_element_type=f32) + bq_ref[...]      # (nh, tq, hd)
    k = jnp.einsum('hsd,hde->hse', xs_b, wk_ref[...],
                   preferred_element_type=f32) + bk_ref[...]      # (nh, S, hd)
    v = jnp.einsum('hsd,hde->hse', xs_b, wv_ref[...],
                   preferred_element_type=f32) + bv_ref[...]      # (nh, S, hd)

    # --- attention scores for all heads in one batched contraction ---
    scores = jnp.einsum('hqe,hke->hqk', q.astype(bf16), k.astype(bf16),
                        preferred_element_type=f32)               # (nh, tq, S)

    # --- causal mask using the global query-row offset of this tile ---
    q0 = pl.program_id(1) * q_tile
    row = jax.lax.broadcasted_iota(jnp.int32, (nh, tq, S), 1) + q0
    col = jax.lax.broadcasted_iota(jnp.int32, (nh, tq, S), 2)
    scores = jnp.where(row >= col, scores, -jnp.inf)

    # --- softmax in f32; denominator reciprocal on the EUP ---
    m = jnp.max(scores, axis=-1, keepdims=True)
    p = jnp.exp(scores - m)
    denom = jnp.sum(p, axis=-1, keepdims=True)
    p = p * pl.reciprocal(denom, approx=True)

    o = jnp.einsum('hqk,hke->hqe', p.astype(bf16), v.astype(bf16),
                   preferred_element_type=f32)                    # (nh, tq, hd)

    # --- output projection: attn @ Wo == sum_h o_h @ Wo_h (no concat/transpose) ---
    proj = jnp.einsum('hqe,hed->hqd', o.astype(bf16), wo_ref[...],
                      preferred_element_type=f32)                 # (nh, tq, D)
    attn = jnp.sum(proj, axis=0) + bo_ref[...]                    # (tq, D)

    # --- residual + LayerNorm 1 (f32) ---
    h1 = xq + attn
    mu1 = jnp.mean(h1, axis=-1, keepdims=True)
    var1 = jnp.mean((h1 - mu1) * (h1 - mu1), axis=-1, keepdims=True)
    h1n = (h1 - mu1) * jax.lax.rsqrt(var1 + eps) * g1_ref[...] + be1_ref[...]

    # --- FFN: Linear -> exact GELU (erf) -> Linear, bf16 matmuls / f32 acc ---
    # (tanh-approx GELU would use the EUP on v5e, but changes numerics vs nn.GELU.)
    f = jnp.dot(h1n.astype(bf16), w1_ref[...],
                preferred_element_type=f32) + b1_ref[...]
    f = 0.5 * f * (1.0 + jax.lax.erf(f * (1.0 / math.sqrt(2.0))))
    f = jnp.dot(f.astype(bf16), w2_ref[...],
                preferred_element_type=f32) + b2_ref[...]

    # --- residual + LayerNorm 2 (f32) ---
    h2 = h1n + f
    mu2 = jnp.mean(h2, axis=-1, keepdims=True)
    var2 = jnp.mean((h2 - mu2) * (h2 - mu2), axis=-1, keepdims=True)
    h2n = (h2 - mu2) * jax.lax.rsqrt(var2 + eps) * g2_ref[...] + be2_ref[...]

    # Dropout: identity (eval mode).  # TODO(synk): training-mode dropout RNG omitted.
    out_ref[0] = h2n.astype(out_ref.dtype)


def gpt_block(x, params, *, num_heads, q_tile=128):
    B, S, D = x.shape
    assert D % num_heads == 0
    hd = D // num_heads
    tq = min(q_tile, S)
    assert S % tq == 0, "sequence length must be divisible by the query tile"
    scale = 1.0 / math.sqrt(hd)
    bf16 = jnp.bfloat16

    # Host-side weight restructuring (free): per-head [H, D, hd] / [H, hd, D]
    # layouts so the kernel never reshapes/slices across the head dimension.
    def heads_in(w):        # (D, D) [in, out] -> (H, D, hd)
        return jnp.transpose(w.reshape(D, num_heads, hd), (1, 0, 2))

    def heads_bias(b):      # (1, D) -> (H, 1, hd)
        return b.reshape(num_heads, hd)[:, None, :]

    wq_h = (heads_in(params["wq"]) * scale).astype(bf16)   # scale folded into Q
    bq_h = heads_bias(params["bq"]) * scale
    wk_h = heads_in(params["wk"]).astype(bf16)
    bk_h = heads_bias(params["bk"])
    wv_h = heads_in(params["wv"]).astype(bf16)
    bv_h = heads_bias(params["bv"])
    wo_h = params["wo"].reshape(num_heads, hd, D).astype(bf16)
    w1 = params["w1"].astype(bf16)
    w2 = params["w2"].astype(bf16)

    # Untiled, VMEM-resident operands (constant across the grid -> no
    # per-step double-buffering of the weights).
    vmem = pl.BlockSpec(memory_space=pltpu.MemorySpace.VMEM)

    kernel = functools.partial(
        gpt_block_kernel, num_heads=num_heads, q_tile=tq, eps=1e-5)

    return pl.pallas_call(
        kernel,
        out_shape=jax.ShapeDtypeStruct((B, S, D), jnp.float32),
        grid_spec=pltpu.PrefetchScalarGridSpec(
            num_scalar_prefetch=0,
            grid=(B, S // tq),
            in_specs=[
                pl.BlockSpec((1, tq, D), lambda b, s: (b, s, 0)),  # query-row tile
                pl.BlockSpec((1, S, D), lambda b, s: (b, 0, 0)),   # full seq (K/V)
                vmem, vmem,   # Wq, bq
                vmem, vmem,   # Wk, bk
                vmem, vmem,   # Wv, bv
                vmem, vmem,   # Wo, bo
                vmem, vmem,   # W1, b1
                vmem, vmem,   # W2, b2
                vmem, vmem,   # ln1 gamma, beta
                vmem, vmem,   # ln2 gamma, beta
            ],
            out_specs=pl.BlockSpec((1, tq, D), lambda b, s: (b, s, 0)),
        ),
        compiler_params=pltpu.CompilerParams(
            dimension_semantics=("parallel", "parallel"),
            vmem_limit_bytes=32 * 1024 * 1024),
    )(
        x, x,
        wq_h, bq_h, wk_h, bk_h, wv_h, bv_h,
        wo_h, params["bo"],
        w1, params["b1"], w2, params["b2"],
        params["g1"], params["be1"], params["g2"], params["be2"],
    )


def init_params(key, d_model, hidden_dim):
    ks = jax.random.split(key, 12)
    s_d = 0.02
    p = {
        # stored as [in, out] (already transposed vs torch's [out, in])
        "wq": jax.random.normal(ks[0], (d_model, d_model), jnp.float32) * s_d,
        "bq": jax.random.normal(ks[1], (1, d_model), jnp.float32) * s_d,
        "wk": jax.random.normal(ks[2], (d_model, d_model), jnp.float32) * s_d,
        "bk": jax.random.normal(ks[3], (1, d_model), jnp.float32) * s_d,
        "wv": jax.random.normal(ks[4], (d_model, d_model), jnp.float32) * s_d,
        "bv": jax.random.normal(ks[5], (1, d_model), jnp.float32) * s_d,
        "wo": jax.random.normal(ks[6], (d_model, d_model), jnp.float32) * s_d,
        "bo": jax.random.normal(ks[7], (1, d_model), jnp.float32) * s_d,
        "w1": jax.random.normal(ks[8], (d_model, hidden_dim), jnp.float32) * s_d,
        "b1": jax.random.normal(ks[9], (1, hidden_dim), jnp.float32) * s_d,
        "w2": jax.random.normal(ks[10], (hidden_dim, d_model), jnp.float32) * s_d,
        "b2": jax.random.normal(ks[11], (1, d_model), jnp.float32) * s_d,
        "g1": jnp.ones((1, d_model), jnp.float32),
        "be1": jnp.zeros((1, d_model), jnp.float32),
        "g2": jnp.ones((1, d_model), jnp.float32),
        "be2": jnp.zeros((1, d_model), jnp.float32),
    }
    return p


def gpt_block_ref(x, p, *, num_heads):
    """Pure-JAX f32 reference matching the PyTorch forward (eval mode)."""
    B, S, D = x.shape
    hd = D // num_heads
    scale = 1.0 / math.sqrt(hd)

    def lin(v, w, b):
        return v @ w + b

    q = lin(x, p["wq"], p["bq"]).reshape(B, S, num_heads, hd).transpose(0, 2, 1, 3)
    k = lin(x, p["wk"], p["bk"]).reshape(B, S, num_heads, hd).transpose(0, 2, 1, 3)
    v = lin(x, p["wv"], p["bv"]).reshape(B, S, num_heads, hd).transpose(0, 2, 1, 3)
    scores = jnp.einsum("bhqd,bhkd->bhqk", q, k) * scale
    mask = jnp.triu(jnp.ones((S, S), bool), k=1)
    scores = jnp.where(mask, -jnp.inf, scores)
    w = jax.nn.softmax(scores, axis=-1)
    attn = jnp.einsum("bhqk,bhkd->bhqd", w, v).transpose(0, 2, 1, 3).reshape(B, S, D)
    attn = lin(attn, p["wo"], p["bo"])

    def ln(v, g, b):
        mu = jnp.mean(v, axis=-1, keepdims=True)
        var = jnp.mean((v - mu) ** 2, axis=-1, keepdims=True)
        return (v - mu) / jnp.sqrt(var + 1e-5) * g + b

    h1 = ln(x + attn, p["g1"], p["be1"])
    f = lin(h1, p["w1"], p["b1"])
    f = jax.nn.gelu(f, approximate=False)
    f = lin(f, p["w2"], p["b2"])
    return ln(h1 + f, p["g2"], p["be2"])


if __name__ == "__main__":
    B, S, D, H, NH = 2, 8, 32, 64, 4
    key = jax.random.PRNGKey(0)
    kx, kp = jax.random.split(key)
    x = jax.random.normal(kx, (B, S, D), jnp.float32)
    params = init_params(kp, D, H)

    out = gpt_block(x, params, num_heads=NH)
    out = jax.block_until_ready(out)

    ref = gpt_block_ref(x, params, num_heads=NH)
    assert out.shape == (B, S, D)
    # bf16 MXU inputs -> looser tolerance vs the f32 reference.
    assert jnp.allclose(out, ref, rtol=2e-2, atol=2e-2), "mismatch vs reference"

    print("KERNEL_OK")
</pallas_src>

<mosaic_0001>
module attributes {stable_mosaic.version = 11 : i64} {
  func.func @gpt_block_kernel(%arg0: i32, %arg1: i32, %arg2: memref<1x8x32xf32, #tpu.memory_space<vmem>>, %arg3: memref<1x8x32xf32, #tpu.memory_space<vmem>>, %arg4: memref<4x32x8xbf16, #tpu.memory_space<vmem>>, %arg5: memref<4x1x8xf32, #tpu.memory_space<vmem>>, %arg6: memref<4x32x8xbf16, #tpu.memory_space<vmem>>, %arg7: memref<4x1x8xf32, #tpu.memory_space<vmem>>, %arg8: memref<4x32x8xbf16, #tpu.memory_space<vmem>>, %arg9: memref<4x1x8xf32, #tpu.memory_space<vmem>>, %arg10: memref<4x8x32xbf16, #tpu.memory_space<vmem>>, %arg11: memref<1x32xf32, #tpu.memory_space<vmem>>, %arg12: memref<32x64xbf16, #tpu.memory_space<vmem>>, %arg13: memref<1x64xf32, #tpu.memory_space<vmem>>, %arg14: memref<64x32xbf16, #tpu.memory_space<vmem>>, %arg15: memref<1x32xf32, #tpu.memory_space<vmem>>, %arg16: memref<1x32xf32, #tpu.memory_space<vmem>>, %arg17: memref<1x32xf32, #tpu.memory_space<vmem>>, %arg18: memref<1x32xf32, #tpu.memory_space<vmem>>, %arg19: memref<1x32xf32, #tpu.memory_space<vmem>>, %arg20: memref<1x8x32xf32, #tpu.memory_space<vmem>>) attributes {dimension_semantics = [#tpu.dimension_semantics<parallel>, #tpu.dimension_semantics<parallel>], iteration_bounds = array<i64: 2, 1>, scalar_prefetch = 0 : i64, scratch_operands = 0 : i64, tpu.core_type = #tpu.core_type<tc>, window_params = [{transform_indices = @transform_0, window_bounds = array<i64: 1, 8, 32>}, {transform_indices = @transform_1, window_bounds = array<i64: 1, 8, 32>}, {pipeline_mode = #tpu.pipeline_mode<synchronous>, transform_indices = @transform_2, window_bounds = array<i64: 4, 32, 8>}, {pipeline_mode = #tpu.pipeline_mode<synchronous>, transform_indices = @transform_3, window_bounds = array<i64: 4, 1, 8>}, {pipeline_mode = #tpu.pipeline_mode<synchronous>, transform_indices = @transform_4, window_bounds = array<i64: 4, 32, 8>}, {pipeline_mode = #tpu.pipeline_mode<synchronous>, transform_indices = @transform_5, window_bounds = array<i64: 4, 1, 8>}, {pipeline_mode = #tpu.pipeline_mode<synchronous>, transform_indices = @transform_6, window_bounds = array<i64: 4, 32, 8>}, {pipeline_mode = #tpu.pipeline_mode<synchronous>, transform_indices = @transform_7, window_bounds = array<i64: 4, 1, 8>}, {pipeline_mode = #tpu.pipeline_mode<synchronous>, transform_indices = @transform_8, window_bounds = array<i64: 4, 8, 32>}, {pipeline_mode = #tpu.pipeline_mode<synchronous>, transform_indices = @transform_9, window_bounds = array<i64: 1, 32>}, {pipeline_mode = #tpu.pipeline_mode<synchronous>, transform_indices = @transform_10, window_bounds = array<i64: 32, 64>}, {pipeline_mode = #tpu.pipeline_mode<synchronous>, transform_indices = @transform_11, window_bounds = array<i64: 1, 64>}, {pipeline_mode = #tpu.pipeline_mode<synchronous>, transform_indices = @transform_12, window_bounds = array<i64: 64, 32>}, {pipeline_mode = #tpu.pipeline_mode<synchronous>, transform_indices = @transform_13, window_bounds = array<i64: 1, 32>}, {pipeline_mode = #tpu.pipeline_mode<synchronous>, transform_indices = @transform_14, window_bounds = array<i64: 1, 32>}, {pipeline_mode = #tpu.pipeline_mode<synchronous>, transform_indices = @transform_15, window_bounds = array<i64: 1, 32>}, {pipeline_mode = #tpu.pipeline_mode<synchronous>, transform_indices = @transform_16, window_bounds = array<i64: 1, 32>}, {pipeline_mode = #tpu.pipeline_mode<synchronous>, transform_indices = @transform_17, window_bounds = array<i64: 1, 32>}, {transform_indices = @transform_18, window_bounds = array<i64: 1, 8, 32>}]} {
    %c0 = arith.constant 0 : index
    %c0_0 = arith.constant 0 : index
    %c0_1 = arith.constant 0 : index
    %0 = vector.load %arg2[%c0, %c0_0, %c0_1] : memref<1x8x32xf32, #tpu.memory_space<vmem>>, vector<1x8x32xf32>
    %1 = vector.shape_cast %0 : vector<1x8x32xf32> to vector<8x32xf32>
    %c0_2 = arith.constant 0 : index
    %c0_3 = arith.constant 0 : index
    %c0_4 = arith.constant 0 : index
    %2 = vector.load %arg3[%c0_2, %c0_3, %c0_4] : memref<1x8x32xf32, #tpu.memory_space<vmem>>, vector<1x8x32xf32>
    %3 = vector.shape_cast %2 : vector<1x8x32xf32> to vector<8x32xf32>
    %4 = arith.truncf %1 : vector<8x32xf32> to vector<8x32xbf16>
    %5 = vector.shape_cast %4 : vector<8x32xbf16> to vector<1x8x32xbf16>
    %6 = vector.broadcast %5 : vector<1x8x32xbf16> to vector<4x8x32xbf16>
    %7 = arith.truncf %3 : vector<8x32xf32> to vector<8x32xbf16>
    %8 = vector.shape_cast %7 : vector<8x32xbf16> to vector<1x8x32xbf16>
    %9 = vector.broadcast %8 : vector<1x8x32xbf16> to vector<4x8x32xbf16>
    %c0_5 = arith.constant 0 : index
    %c0_6 = arith.constant 0 : index
    %c0_7 = arith.constant 0 : index
    %10 = vector.load %arg4[%c0_5, %c0_6, %c0_7] : memref<4x32x8xbf16, #tpu.memory_space<vmem>>, vector<4x32x8xbf16>
    "tpu.trace_start"() <{level = 10 : i32, message = "hsd,hde->hse"}> : () -> ()
    %cst = arith.constant dense<0.000000e+00> : vector<4x8x8xf32>
    %11 = tpu.matmul %6, %10, %cst {dimension_numbers = #tpu.dot_dimension_numbers<[2], [1], [1], [2], [0, 0, 0, 1, 1, 2], [0], [0]>} : vector<4x8x32xbf16>, vector<4x32x8xbf16>, vector<4x8x8xf32> -> vector<4x8x8xf32>
    "tpu.trace_stop"() : () -> ()
    %c0_8 = arith.constant 0 : index
    %c0_9 = arith.constant 0 : index
    %c0_10 = arith.constant 0 : index
    %12 = vector.load %arg5[%c0_8, %c0_9, %c0_10] : memref<4x1x8xf32, #tpu.memory_space<vmem>>, vector<4x1x8xf32>
    %13 = vector.broadcast %12 : vector<4x1x8xf32> to vector<4x8x8xf32>
    %14 = arith.addf %11, %13 : vector<4x8x8xf32>
    %c0_11 = arith.constant 0 : index
    %c0_12 = arith.constant 0 : index
    %c0_13 = arith.constant 0 : index
    %15 = vector.load %arg6[%c0_11, %c0_12, %c0_13] : memref<4x32x8xbf16, #tpu.memory_space<vmem>>, vector<4x32x8xbf16>
    "tpu.trace_start"() <{level = 10 : i32, message = "hsd,hde->hse"}> : () -> ()
    %cst_14 = arith.constant dense<0.000000e+00> : vector<4x8x8xf32>
    %16 = tpu.matmul %9, %15, %cst_14 {dimension_numbers = #tpu.dot_dimension_numbers<[2], [1], [1], [2], [0, 0, 0, 1, 1, 2], [0], [0]>} : vector<4x8x32xbf16>, vector<4x32x8xbf16>, vector<4x8x8xf32> -> vector<4x8x8xf32>
    "tpu.trace_stop"() : () -> ()
    %c0_15 = arith.constant 0 : index
    %c0_16 = arith.constant 0 : index
    %c0_17 = arith.constant 0 : index
    %17 = vector.load %arg7[%c0_15, %c0_16, %c0_17] : memref<4x1x8xf32, #tpu.memory_space<vmem>>, vector<4x1x8xf32>
    %18 = vector.broadcast %17 : vector<4x1x8xf32> to vector<4x8x8xf32>
    %19 = arith.addf %16, %18 : vector<4x8x8xf32>
    %c0_18 = arith.constant 0 : index
    %c0_19 = arith.constant 0 : index
    %c0_20 = arith.constant 0 : index
    %20 = vector.load %arg8[%c0_18, %c0_19, %c0_20] : memref<4x32x8xbf16, #tpu.memory_space<vmem>>, vector<4x32x8xbf16>
    "tpu.trace_start"() <{level = 10 : i32, message = "hsd,hde->hse"}> : () -> ()
    %cst_21 = arith.constant dense<0.000000e+00> : vector<4x8x8xf32>
    %21 = tpu.matmul %9, %20, %cst_21 {dimension_numbers = #tpu.dot_dimension_numbers<[2], [1], [1], [2], [0, 0, 0, 1, 1, 2], [0], [0]>} : vector<4x8x32xbf16>, vector<4x32x8xbf16>, vector<4x8x8xf32> -> vector<4x8x8xf32>
    "tpu.trace_stop"() : () -> ()
    %c0_22 = arith.constant 0 : index
    %c0_23 = arith.constant 0 : index
    %c0_24 = arith.constant 0 : index
    %22 = vector.load %arg9[%c0_22, %c0_23, %c0_24] : memref<4x1x8xf32, #tpu.memory_space<vmem>>, vector<4x1x8xf32>
    %23 = vector.broadcast %22 : vector<4x1x8xf32> to vector<4x8x8xf32>
    %24 = arith.addf %21, %23 : vector<4x8x8xf32>
    %25 = arith.truncf %14 : vector<4x8x8xf32> to vector<4x8x8xbf16>
    %26 = arith.truncf %19 : vector<4x8x8xf32> to vector<4x8x8xbf16>
    "tpu.trace_start"() <{level = 10 : i32, message = "hqe,hke->hqk"}> : () -> ()
    %cst_25 = arith.constant dense<0.000000e+00> : vector<4x8x8xf32>
    %27 = tpu.matmul %25, %26, %cst_25 {dimension_numbers = #tpu.dot_dimension_numbers<[2], [2], [1], [1], [0, 0, 0, 1, 1, 1], [0], [0]>} : vector<4x8x8xbf16>, vector<4x8x8xbf16>, vector<4x8x8xf32> -> vector<4x8x8xf32>
    "tpu.trace_stop"() : () -> ()
    %c8_i32 = arith.constant 8 : i32
    %28 = arith.muli %arg1, %c8_i32 : i32
    %29 = tpu.iota {dimensions = array<i32: 1>} : vector<4x8x8xi32>
    %30 = vector.broadcast %28 : i32 to vector<4x8x8xi32>
    %31 = arith.addi %29, %30 : vector<4x8x8xi32>
    %32 = tpu.iota {dimensions = array<i32: 2>} : vector<4x8x8xi32>
    %33 = arith.cmpi sge, %31, %32 : vector<4x8x8xi32>
    %cst_26 = arith.constant 0xFF800000 : f32
    %34 = vector.broadcast %cst_26 : f32 to vector<4x8x8xf32>
    %35 = arith.select %33, %27, %34 : vector<4x8x8xi1>, vector<4x8x8xf32>
    %cst_27 = arith.constant dense<0xFF800000> : vector<4x8xf32>
    %36 = vector.multi_reduction <maximumf>, %35, %cst_27 [2] : vector<4x8x8xf32> to vector<4x8xf32>
    %37 = vector.shape_cast %36 : vector<4x8xf32> to vector<4x8x1xf32>
    %38 = vector.broadcast %37 : vector<4x8x1xf32> to vector<4x8x8xf32>
    %39 = arith.subf %35, %38 : vector<4x8x8xf32>
    %40 = math.exp %39 : vector<4x8x8xf32>
    %cst_28 = arith.constant dense<0.000000e+00> : vector<4x8xf32>
    %41 = vector.multi_reduction <add>, %40, %cst_28 [2] : vector<4x8x8xf32> to vector<4x8xf32>
    %42 = vector.shape_cast %41 : vector<4x8xf32> to vector<4x8x1xf32>
    %43 = tpu.reciprocal %42 {approx = true} : vector<4x8x1xf32> -> vector<4x8x1xf32>
    %44 = vector.broadcast %43 : vector<4x8x1xf32> to vector<4x8x8xf32>
    %45 = arith.mulf %40, %44 : vector<4x8x8xf32>
    %46 = arith.truncf %45 : vector<4x8x8xf32> to vector<4x8x8xbf16>
    %47 = arith.truncf %24 : vector<4x8x8xf32> to vector<4x8x8xbf16>
    "tpu.trace_start"() <{level = 10 : i32, message = "hqk,hke->hqe"}> : () -> ()
    %cst_29 = arith.constant dense<0.000000e+00> : vector<4x8x8xf32>
    %48 = tpu.matmul %46, %47, %cst_29 {dimension_numbers = #tpu.dot_dimension_numbers<[2], [1], [1], [2], [0, 0, 0, 1, 1, 2], [0], [0]>} : vector<4x8x8xbf16>, vector<4x8x8xbf16>, vector<4x8x8xf32> -> vector<4x8x8xf32>
    "tpu.trace_stop"() : () -> ()
    %49 = arith.truncf %48 : vector<4x8x8xf32> to vector<4x8x8xbf16>
    %c0_30 = arith.constant 0 : index
    %c0_31 = arith.constant 0 : index
    %c0_32 = arith.constant 0 : index
    %50 = vector.load %arg10[%c0_30, %c0_31, %c0_32] : memref<4x8x32xbf16, #tpu.memory_space<vmem>>, vector<4x8x32xbf16>
    "tpu.trace_start"() <{level = 10 : i32, message = "hqe,hed->hqd"}> : () -> ()
    %cst_33 = arith.constant dense<0.000000e+00> : vector<4x8x32xf32>
    %51 = tpu.matmul %49, %50, %cst_33 {dimension_numbers = #tpu.dot_dimension_numbers<[2], [1], [1], [2], [0, 0, 0, 1, 1, 2], [0], [0]>} : vector<4x8x8xbf16>, vector<4x8x32xbf16>, vector<4x8x32xf32> -> vector<4x8x32xf32>
    "tpu.trace_stop"() : () -> ()
    %cst_34 = arith.constant dense<0.000000e+00> : vector<8x32xf32>
    %52 = vector.multi_reduction <add>, %51, %cst_34 [0] : vector<4x8x32xf32> to vector<8x32xf32>
    %c0_35 = arith.constant 0 : index
    %c0_36 = arith.constant 0 : index
    %53 = vector.load %arg11[%c0_35, %c0_36] : memref<1x32xf32, #tpu.memory_space<vmem>>, vector<1x32xf32>
    %54 = vector.broadcast %53 : vector<1x32xf32> to vector<8x32xf32>
    %55 = arith.addf %52, %54 : vector<8x32xf32>
    %56 = arith.addf %1, %55 : vector<8x32xf32>
    %cst_37 = arith.constant dense<0.000000e+00> : vector<8xf32>
    %57 = vector.multi_reduction <add>, %56, %cst_37 [1] : vector<8x32xf32> to vector<8xf32>
    %58 = vector.shape_cast %57 : vector<8xf32> to vector<8x1xf32>
    %cst_38 = arith.constant 3.200000e+01 : f32
    %59 = vector.broadcast %cst_38 : f32 to vector<8x1xf32>
    %60 = arith.divf %58, %59 : vector<8x1xf32>
    %61 = vector.broadcast %60 : vector<8x1xf32> to vector<8x32xf32>
    %62 = arith.subf %56, %61 : vector<8x32xf32>
    %63 = vector.broadcast %60 : vector<8x1xf32> to vector<8x32xf32>
    %64 = arith.subf %56, %63 : vector<8x32xf32>
    %65 = arith.mulf %62, %64 : vector<8x32xf32>
    %cst_39 = arith.constant dense<0.000000e+00> : vector<8xf32>
    %66 = vector.multi_reduction <add>, %65, %cst_39 [1] : vector<8x32xf32> to vector<8xf32>
    %67 = vector.shape_cast %66 : vector<8xf32> to vector<8x1xf32>
    %cst_40 = arith.constant 3.200000e+01 : f32
    %68 = vector.broadcast %cst_40 : f32 to vector<8x1xf32>
    %69 = arith.divf %67, %68 : vector<8x1xf32>
    %70 = vector.broadcast %60 : vector<8x1xf32> to vector<8x32xf32>
    %71 = arith.subf %56, %70 : vector<8x32xf32>
    %cst_41 = arith.constant 9.99999974E-6 : f32
    %72 = vector.broadcast %cst_41 : f32 to vector<8x1xf32>
    %73 = arith.addf %69, %72 : vector<8x1xf32>
    %74 = math.rsqrt %73 : vector<8x1xf32>
    %75 = vector.broadcast %74 : vector<8x1xf32> to vector<8x32xf32>
    %76 = arith.mulf %71, %75 : vector<8x32xf32>
    %c0_42 = arith.constant 0 : index
    %c0_43 = arith.constant 0 : index
    %77 = vector.load %arg16[%c0_42, %c0_43] : memref<1x32xf32, #tpu.memory_space<vmem>>, vector<1x32xf32>
    %78 = vector.broadcast %77 : vector<1x32xf32> to vector<8x32xf32>
    %79 = arith.mulf %76, %78 : vector<8x32xf32>
    %c0_44 = arith.constant 0 : index
    %c0_45 = arith.constant 0 : index
    %80 = vector.load %arg17[%c0_44, %c0_45] : memref<1x32xf32, #tpu.memory_space<vmem>>, vector<1x32xf32>
    %81 = vector.broadcast %80 : vector<1x32xf32> to vector<8x32xf32>
    %82 = arith.addf %79, %81 : vector<8x32xf32>
    %83 = arith.truncf %82 : vector<8x32xf32> to vector<8x32xbf16>
    %c0_46 = arith.constant 0 : index
    %c0_47 = arith.constant 0 : index
    %84 = vector.load %arg12[%c0_46, %c0_47] : memref<32x64xbf16, #tpu.memory_space<vmem>>, vector<32x64xbf16>
    %cst_48 = arith.constant dense<0.000000e+00> : vector<8x64xf32>
    %85 = tpu.matmul %83, %84, %cst_48 {dimension_numbers = #tpu.dot_dimension_numbers<[1], [0], [0], [1], [0, 0, 1, 1], [], []>} : vector<8x32xbf16>, vector<32x64xbf16>, vector<8x64xf32> -> vector<8x64xf32>
    %c0_49 = arith.constant 0 : index
    %c0_50 = arith.constant 0 : index
    %86 = vector.load %arg13[%c0_49, %c0_50] : memref<1x64xf32, #tpu.memory_space<vmem>>, vector<1x64xf32>
    %87 = vector.broadcast %86 : vector<1x64xf32> to vector<8x64xf32>
    %88 = arith.addf %85, %87 : vector<8x64xf32>
    %cst_51 = arith.constant 5.000000e-01 : f32
    %89 = vector.broadcast %cst_51 : f32 to vector<8x64xf32>
    %90 = arith.mulf %89, %88 : vector<8x64xf32>
    %cst_52 = arith.constant 0.707106769 : f32
    %91 = vector.broadcast %cst_52 : f32 to vector<8x64xf32>
    %92 = arith.mulf %88, %91 : vector<8x64xf32>
    %93 = math.erf %92 : vector<8x64xf32>
    %cst_53 = arith.constant 1.000000e+00 : f32
    %94 = vector.broadcast %cst_53 : f32 to vector<8x64xf32>
    %95 = arith.addf %94, %93 : vector<8x64xf32>
    %96 = arith.mulf %90, %95 : vector<8x64xf32>
    %97 = arith.truncf %96 : vector<8x64xf32> to vector<8x64xbf16>
    %c0_54 = arith.constant 0 : index
    %c0_55 = arith.constant 0 : index
    %98 = vector.load %arg14[%c0_54, %c0_55] : memref<64x32xbf16, #tpu.memory_space<vmem>>, vector<64x32xbf16>
    %cst_56 = arith.constant dense<0.000000e+00> : vector<8x32xf32>
    %99 = tpu.matmul %97, %98, %cst_56 {dimension_numbers = #tpu.dot_dimension_numbers<[1], [0], [0], [1], [0, 0, 1, 1], [], []>} : vector<8x64xbf16>, vector<64x32xbf16>, vector<8x32xf32> -> vector<8x32xf32>
    %c0_57 = arith.constant 0 : index
    %c0_58 = arith.constant 0 : index
    %100 = vector.load %arg15[%c0_57, %c0_58] : memref<1x32xf32, #tpu.memory_space<vmem>>, vector<1x32xf32>
    %101 = vector.broadcast %100 : vector<1x32xf32> to vector<8x32xf32>
    %102 = arith.addf %99, %101 : vector<8x32xf32>
    %103 = arith.addf %82, %102 : vector<8x32xf32>
    %cst_59 = arith.constant dense<0.000000e+00> : vector<8xf32>
    %104 = vector.multi_reduction <add>, %103, %cst_59 [1] : vector<8x32xf32> to vector<8xf32>
    %105 = vector.shape_cast %104 : vector<8xf32> to vector<8x1xf32>
    %cst_60 = arith.constant 3.200000e+01 : f32
    %106 = vector.broadcast %cst_60 : f32 to vector<8x1xf32>
    %107 = arith.divf %105, %106 : vector<8x1xf32>
    %108 = vector.broadcast %107 : vector<8x1xf32> to vector<8x32xf32>
    %109 = arith.subf %103, %108 : vector<8x32xf32>
    %110 = vector.broadcast %107 : vector<8x1xf32> to vector<8x32xf32>
    %111 = arith.subf %103, %110 : vector<8x32xf32>
    %112 = arith.mulf %109, %111 : vector<8x32xf32>
    %cst_61 = arith.constant dense<0.000000e+00> : vector<8xf32>
    %113 = vector.multi_reduction <add>, %112, %cst_61 [1] : vector<8x32xf32> to vector<8xf32>
    %114 = vector.shape_cast %113 : vector<8xf32> to vector<8x1xf32>
    %cst_62 = arith.constant 3.200000e+01 : f32
    %115 = vector.broadcast %cst_62 : f32 to vector<8x1xf32>
    %116 = arith.divf %114, %115 : vector<8x1xf32>
    %117 = vector.broadcast %107 : vector<8x1xf32> to vector<8x32xf32>
    %118 = arith.subf %103, %117 : vector<8x32xf32>
    %cst_63 = arith.constant 9.99999974E-6 : f32
    %119 = vector.broadcast %cst_63 : f32 to vector<8x1xf32>
    %120 = arith.addf %116, %119 : vector<8x1xf32>
    %121 = math.rsqrt %120 : vector<8x1xf32>
    %122 = vector.broadcast %121 : vector<8x1xf32> to vector<8x32xf32>
    %123 = arith.mulf %118, %122 : vector<8x32xf32>
    %c0_64 = arith.constant 0 : index
    %c0_65 = arith.constant 0 : index
    %124 = vector.load %arg18[%c0_64, %c0_65] : memref<1x32xf32, #tpu.memory_space<vmem>>, vector<1x32xf32>
    %125 = vector.broadcast %124 : vector<1x32xf32> to vector<8x32xf32>
    %126 = arith.mulf %123, %125 : vector<8x32xf32>
    %c0_66 = arith.constant 0 : index
    %c0_67 = arith.constant 0 : index
    %127 = vector.load %arg19[%c0_66, %c0_67] : memref<1x32xf32, #tpu.memory_space<vmem>>, vector<1x32xf32>
    %128 = vector.broadcast %127 : vector<1x32xf32> to vector<8x32xf32>
    %129 = arith.addf %126, %128 : vector<8x32xf32>
    %c0_68 = arith.constant 0 : index
    %c0_69 = arith.constant 0 : index
    %c0_70 = arith.constant 0 : index
    %130 = vector.load %arg20[%c0_68, %c0_69, %c0_70] : memref<1x8x32xf32, #tpu.memory_space<vmem>>, vector<1x8x32xf32>
    %131 = vector.shape_cast %130 : vector<1x8x32xf32> to vector<8x32xf32>
    %132 = vector.shape_cast %129 : vector<8x32xf32> to vector<1x8x32xf32>
    tpu.vector_store %arg20[%c0_68, %c0_69, %c0_70], %132 {strides = array<i32>} : memref<1x8x32xf32, #tpu.memory_space<vmem>>, vector<1x8x32xf32>,
    return
  }
  func.func @transform_0(%arg0: i32, %arg1: i32) -> (i32, i32, i32) {
    %c0_i32 = arith.constant 0 : i32
    %c0_i32_0 = arith.constant 0 : i32
    return %arg0, %arg1, %c0_i32 : i32, i32, i32
  }
  func.func @transform_1(%arg0: i32, %arg1: i32) -> (i32, i32, i32) {
    %c0_i32 = arith.constant 0 : i32
    %c0_i32_0 = arith.constant 0 : i32
    %c0_i32_1 = arith.constant 0 : i32
    return %arg0, %c0_i32, %c0_i32_0 : i32, i32, i32
  }
  func.func @transform_2(%arg0: i32, %arg1: i32) -> (i32, i32, i32) {
    %c0_i32 = arith.constant 0 : i32
    %c0_i32_0 = arith.constant 0 : i32
    %c0_i32_1 = arith.constant 0 : i32
    %c0_i32_2 = arith.constant 0 : i32
    return %c0_i32, %c0_i32_0, %c0_i32_1 : i32, i32, i32
  }
  func.func @transform_3(%arg0: i32, %arg1: i32) -> (i32, i32, i32) {
    %c0_i32 = arith.constant 0 : i32
    %c0_i32_0 = arith.constant 0 : i32
    %c0_i32_1 = arith.constant 0 : i32
    %c0_i32_2 = arith.constant 0 : i32
    return %c0_i32, %c0_i32_0, %c0_i32_1 : i32, i32, i32
  }
  func.func @transform_4(%arg0: i32, %arg1: i32) -> (i32, i32, i32) {
    %c0_i32 = arith.constant 0 : i32
    %c0_i32_0 = arith.constant 0 : i32
    %c0_i32_1 = arith.constant 0 : i32
    %c0_i32_2 = arith.constant 0 : i32
    return %c0_i32, %c0_i32_0, %c0_i32_1 : i32, i32, i32
  }
  func.func @transform_5(%arg0: i32, %arg1: i32) -> (i32, i32, i32) {
    %c0_i32 = arith.constant 0 : i32
    %c0_i32_0 = arith.constant 0 : i32
    %c0_i32_1 = arith.constant 0 : i32
    %c0_i32_2 = arith.constant 0 : i32
    return %c0_i32, %c0_i32_0, %c0_i32_1 : i32, i32, i32
  }
  func.func @transform_6(%arg0: i32, %arg1: i32) -> (i32, i32, i32) {
    %c0_i32 = arith.constant 0 : i32
    %c0_i32_0 = arith.constant 0 : i32
    %c0_i32_1 = arith.constant 0 : i32
    %c0_i32_2 = arith.constant 0 : i32
    return %c0_i32, %c0_i32_0, %c0_i32_1 : i32, i32, i32
  }
  func.func @transform_7(%arg0: i32, %arg1: i32) -> (i32, i32, i32) {
    %c0_i32 = arith.constant 0 : i32
    %c0_i32_0 = arith.constant 0 : i32
    %c0_i32_1 = arith.constant 0 : i32
    %c0_i32_2 = arith.constant 0 : i32
    return %c0_i32, %c0_i32_0, %c0_i32_1 : i32, i32, i32
  }
  func.func @transform_8(%arg0: i32, %arg1: i32) -> (i32, i32, i32) {
    %c0_i32 = arith.constant 0 : i32
    %c0_i32_0 = arith.constant 0 : i32
    %c0_i32_1 = arith.constant 0 : i32
    %c0_i32_2 = arith.constant 0 : i32
    return %c0_i32, %c0_i32_0, %c0_i32_1 : i32, i32, i32
  }
  func.func @transform_9(%arg0: i32, %arg1: i32) -> (i32, i32) {
    %c0_i32 = arith.constant 0 : i32
    %c0_i32_0 = arith.constant 0 : i32
    %c0_i32_1 = arith.constant 0 : i32
    return %c0_i32, %c0_i32_0 : i32, i32
  }
  func.func @transform_10(%arg0: i32, %arg1: i32) -> (i32, i32) {
    %c0_i32 = arith.constant 0 : i32
    %c0_i32_0 = arith.constant 0 : i32
    %c0_i32_1 = arith.constant 0 : i32
    return %c0_i32, %c0_i32_0 : i32, i32
  }
  func.func @transform_11(%arg0: i32, %arg1: i32) -> (i32, i32) {
    %c0_i32 = arith.constant 0 : i32
    %c0_i32_0 = arith.constant 0 : i32
    %c0_i32_1 = arith.constant 0 : i32
    return %c0_i32, %c0_i32_0 : i32, i32
  }
  func.func @transform_12(%arg0: i32, %arg1: i32) -> (i32, i32) {
    %c0_i32 = arith.constant 0 : i32
    %c0_i32_0 = arith.constant 0 : i32
    %c0_i32_1 = arith.constant 0 : i32
    return %c0_i32, %c0_i32_0 : i32, i32
  }
  func.func @transform_13(%arg0: i32, %arg1: i32) -> (i32, i32) {
    %c0_i32 = arith.constant 0 : i32
    %c0_i32_0 = arith.constant 0 : i32
    %c0_i32_1 = arith.constant 0 : i32
    return %c0_i32, %c0_i32_0 : i32, i32
  }
  func.func @transform_14(%arg0: i32, %arg1: i32) -> (i32, i32) {
    %c0_i32 = arith.constant 0 : i32
    %c0_i32_0 = arith.constant 0 : i32
    %c0_i32_1 = arith.constant 0 : i32
    return %c0_i32, %c0_i32_0 : i32, i32
  }
  func.func @transform_15(%arg0: i32, %arg1: i32) -> (i32, i32) {
    %c0_i32 = arith.constant 0 : i32
    %c0_i32_0 = arith.constant 0 : i32
    %c0_i32_1 = arith.constant 0 : i32
    return %c0_i32, %c0_i32_0 : i32, i32
  }
  func.func @transform_16(%arg0: i32, %arg1: i32) -> (i32, i32) {
    %c0_i32 = arith.constant 0 : i32
    %c0_i32_0 = arith.constant 0 : i32
    %c0_i32_1 = arith.constant 0 : i32
    return %c0_i32, %c0_i32_0 : i32, i32
  }
  func.func @transform_17(%arg0: i32, %arg1: i32) -> (i32, i32) {
    %c0_i32 = arith.constant 0 : i32
    %c0_i32_0 = arith.constant 0 : i32
    %c0_i32_1 = arith.constant 0 : i32
    return %c0_i32, %c0_i32_0 : i32, i32
  }
  func.func @transform_18(%arg0: i32, %arg1: i32) -> (i32, i32, i32) {
    %c0_i32 = arith.constant 0 : i32
    %c0_i32_0 = arith.constant 0 : i32
    return %arg0, %arg1, %c0_i32 : i32, i32, i32
  }
}

</mosaic_0001>

<bundles_post_ra>
// kernel: tpu_custom_call.1
= control target key start
LH: loop header
LB: loop body
LE: loop exit
PB: predicated region body
PF: predicated region fallthrough
CT: control target
= control target key end

     0   :  { %s3398_s0 = inlined_call_operand.vmem [shape: f32[2,8,32], index: 0, kind: input, shape index: {}]   ;;  %s3399_s1 = inlined_call_operand.vmem [shape: f32[2,8,32], index: 1, kind: input, shape index: {}]   ;;  %s3400_s2 = inlined_call_operand.vmem [shape: bf16[4,32,8], index: 2, kind: input, shape index: {}]   ;;  %s3401_s3 = inlined_call_operand.vmem [shape: f32[4,1,8], index: 3, kind: input, shape index: {}]   ;;  %s3402_s4 = inlined_call_operand.vmem [shape: bf16[4,32,8], index: 4, kind: input, shape index: {}]   ;;  %s3403_s5 = inlined_call_operand.vmem [shape: f32[4,1,8], index: 5, kind: input, shape index: {}]   ;;  %s3404_s6 = inlined_call_operand.vmem [shape: bf16[4,32,8], index: 6, kind: input, shape index: {}]   ;;  %s3405_s7 = inlined_call_operand.vmem [shape: f32[4,1,8], index: 7, kind: input, shape index: {}]   ;;  %s3406_s8 = inlined_call_operand.vmem [shape: bf16[4,8,32], index: 8, kind: input, shape index: {}]   ;;  %s3407_s9 = inlined_call_operand.vmem [shape: f32[1,32], index: 9, kind: input, shape index: {}]   ;;  %s3408_s10 = inlined_call_operand.vmem [shape: bf16[32,64], index: 10, kind: input, shape index: {}]   ;;  %s3409_s11 = inlined_call_operand.vmem [shape: f32[1,64], index: 11, kind: input, shape index: {}]   ;;  %s3410_s12 = inlined_call_operand.vmem [shape: bf16[64,32], index: 12, kind: input, shape index: {}]   ;;  %s3411_s13 = inlined_call_operand.vmem [shape: f32[1,32], index: 13, kind: input, shape index: {}]   ;;  %s3412_s14 = inlined_call_operand.vmem [shape: f32[1,32], index: 14, kind: input, shape index: {}]   ;;  %s3413_s15 = inlined_call_operand.vmem [shape: f32[1,32], index: 15, kind: input, shape index: {}]   ;;  %s3414_s16 = inlined_call_operand.vmem [shape: f32[1,32], index: 16, kind: input, shape index: {}]   ;;  %s3415_s17 = inlined_call_operand.vmem [shape: f32[1,32], index: 17, kind: input, shape index: {}]   ;;  %s3416_s18 = inlined_call_operand.hbm [shape: f32[2,8,32], index: 18, kind: output, shape index: {}]  }
   0x1   :  { %3424 = sst [smem:[#allocation10_spill]] %s3398_s0 }
   0x2   :  { %3425 = sst [smem:[#allocation11_spill]] %s3399_s1 }
   0x3   :  { %3426 = sst [smem:[#allocation12_spill]] %s3400_s2 }
   0x4   :  { %3427 = sst [smem:[#allocation13_spill]] %s3401_s3 }
   0x5   :  { %3428 = sst [smem:[#allocation14_spill]] %s3402_s4 }
   0x6   :  { %3429 = sst [smem:[#allocation15_spill]] %s3403_s5 }
   0x7   :  { %3430 = sst [smem:[#allocation16_spill]] %s3416_s18 }
   0x8   :  { %23 = vsyncpa [#allocation3], 0 }
   0x9   :  { %25 = vsyncpa [#allocation3 + $0x1], 0  ;;  %s2974_s27 = smov 0   ;;  %s2976_s28 = smov 0  }
   0xa   :  { %s2978_s29 = smov 0   ;;  %s2980_s30 = smov 0  }
   0xb   :  { %s2982_s0 = smov 0   ;;  %s2984_s19 = smov 0  }
   0xc LB: > { %3431 = sst [smem:[#allocation5_spill]] %s2854_s27  ;;  %s2346_s1 = sadd.s32 4294967295, %s2874_s19   ;;  %s2874_s19 = sphi %s2984_s19, %s31_s19   ;;  %s2870_s0 = sphi %s2982_s0, %s3450_s0   ;;  %s2866_s30 = sphi %s2980_s30, %s3449_s30   ;;  %s2862_s29 = sphi %s2978_s29, %s3448_s29   ;;  %s2858_s28 = sphi %s2976_s28, %s3452_s28   ;;  %s2854_s27 = sphi %s2974_s27, %s3451_s27  }
   0xd   : > { %3432 = sst [smem:[#allocation6_spill]] %s2862_s29  ;;  %s2347_s20 = sadd.s32 4294967294, %s2874_s19  }
   0xe   : > { %3433 = sst [smem:[#allocation7_spill]] %s2870_s0  ;;  %s43_s21 = sadd.s32 1, %s2870_s0 }
   0xf   : > { %s442_s22 = sadd.s32 1, %s2862_s29  ;;  %p45_p0 = scmp.ge.s32.totalorder %s43_s21, 2 }
  0x10   : > { %p452_p1 = scmp.ne.s32.totalorder %s2862_s29, %s2858_s28  ;;  %p453_p2 = scmp.eq.s32.totalorder %s2346_s1, 1 }
  0x11   : > { %p458_p3 = scmp.ne.s32.totalorder %s2858_s28, %s2854_s27  ;;  %s3454_s21 = smov (%p45_p0, %s43_s21), 0 }
  0x12   : > { %3434 = sst [smem:[#allocation8_spill]] %s3454_s21  ;;  %p3014_p4 = por %p453_p2, %p452_p1 }
  0x13   : > { %p459_p5 = scmp.eq.s32.totalorder %s2347_s20, 1  ;;  %s437_s23 = ssub.s32 %s2870_s0, %s3454_s21 }
  0x14   : > { %p2350_p6 = scmp.ge.s32.totalorder %s2874_s19, 1  ;;  %p440_p7 = scmp.eq.s32.totalorder %s437_s23, 0 }
  0x15   : > { %p3021_p8 = por %p459_p5, %p458_p3  ;;  %p542_p9 = scmp.lt.s32.totalorder %s2874_s19, 3 }
  0x16   : > { %s3027_s25 = scalar_select %p440_p7, %s2862_s29, %s442_s22  }
  0x17   : > { %p543_p10 = pnand %p2350_p6, %p542_p9 }
  0x18   : > { %3437 = sst [smem:[#allocation9_spill]] %s3027_s25  ;;  %p602_p11 = scmp.lt.s32.totalorder (!%p543_p10), %s2866_s30, 1 }
  0x19   : > { %546 = sbr.rel (%p543_p10) target bundleno = 2220 (0x8ac), region = 92  ;;  %s3438_s27 = sld [smem:[#allocation12_spill]] (!%p543_p10) }
  0x1a   : > { %s3440_s22 = sld [smem:[#allocation10_spill]] (!%p543_p10)  ;;  %s599_s23 = sand.u32 (!%p543_p10), 1, %s2858_s28  }
  0x1b   : > { %s3442_s4 = sld [smem:[#allocation14_spill]] (!%p543_p10)  ;;  %s2430_s29 = sshll.u32 (!%p543_p10), %s2866_s30, 7 }
  0x1c   : > { %s3443_s5 = sld [smem:[#allocation15_spill]] (!%p543_p10)  ;;  %s2878_s26 = smov (!%p543_p10), [#allocation2]  }
  0x1d   : > { %s3444_s3 = sld [smem:[#allocation13_spill]] (!%p543_p10) }
  0x1e   : > { %v2876_v1 = vmov 0.0   ;;  %vm2877_vm0 = vmmov 0   ;;  %s603_s1 = scalar_select %p602_p11, %s2866_s30, 1  ;;  %vm674_vm1 = vcmask 261120   ;;  %v2762_v21 = vld [vmem:[%s3404_s6 + $0x8] sm:$0xff]   ;;  %v2763_v22 = vld [vmem:[%s3404_s6] sm:$0xff]  }
  0x1f   : > { %s3439_s18 = smov %s3438_s27  ;;  %v2746_v0 = vld [vmem:[%s3438_s27 + $0x8] sm:$0xff]   ;;  %2501 = vmatprep.subr.bf16.mxu0 %v2876_v1  ;;  %2509 = vmatprep.subr.bf16.mxu1 %v2876_v1  ;;  %v2764_v23 = vld [vmem:[%s3404_s6 + $0x18] sm:$0xff]   ;;  %v2765_v24 = vld [vmem:[%s3404_s6 + $0x10] sm:$0xff]   ;;  %vm1389_vm2 = vcmask 64512   ;;  %vm1641_vm3 = vcmask 1043456   ;;  %vm2173_vm5 = vcmask 523264  }
  0x20   : > { %v2747_v2 = vld [vmem:[%s3439_s18 + $0x18] sm:$0xff]   ;;  %2502 = vmatpush3.bf16.msra.mxu0 %v2746_v0  ;;  %v2748_v3 = vld [vmem:[%s3439_s18] sm:$0xff]   ;;  %2505 = vmatprep.mubr.msk.bf16.mxu0 %vm2877_vm0, %v2876_v1  ;;  %v2749_v4 = vld [vmem:[%s3439_s18 + $0x10] sm:$0xff]   ;;  %s2352_s21 = sshll.u32 %s603_s1, 3  ;;  %s2802_s1 = sshll.u32 %s2878_s26, 4  ;;  %s2803_s1 = int_to_ptr.vmem [resolvable:$false] %s2802_s1 }
  0x21   : > { %2510 = vmatpush3.bf16.msra.mxu1 %v2747_v2  ;;  %2503 = vmatprep.subr.bf16.mxu0 %v2876_v1  ;;  %s608_s0 = scalar_lea.vmem %s3440_s22, %s2352_s21  ;;  %v2750_v5 = vld [vmem:[%s3439_s18 + $0x28] sm:$0xff]   ;;  %v2751_v7 = vld [vmem:[%s3439_s18 + $0x38] sm:$0xff]   ;;  %v2752_v9 = vld [vmem:[%s3439_s18 + $0x20] sm:$0xff]   ;;  %s3441_s22 = sld [smem:[#allocation11_spill]] }
  0x22   : > { %2511 = vmatprep.subr.bf16.mxu1 %v2876_v1  ;;  %2513 = vmatprep.mubr.msk.bf16.mxu1 %vm2877_vm0, %v2876_v1  ;;  %v3058_v6 = vld [vmem:[%s608_s0] sm:$0xff]  ;;  %v2753_v10 = vld [vmem:[%s3439_s18 + $0x30] sm:$0xff]   ;;  %v2754_v11 = vld [vmem:[%s3442_s4 + $0x8] sm:$0xff]   ;;  %s2804_s30 = scalar_lea.vmem %s2803_s1, 256 }
  0x23   : > { %v616_v8 = vpack.c.bf16 %v3058_v6, %v3058_v6  ;;  %v2755_v12 = vld [vmem:[%s3442_s4 + $0x18] sm:$0xff]   ;;  %v2756_v14 = vld [vmem:[%s3442_s4] sm:$0xff]   ;;  %v2757_v15 = vld [vmem:[%s3442_s4 + $0x10] sm:$0xff]  }
  0x24   : > { %2504 = vmatpush3.bf16.msra.mxu0 %v2748_v3  ;;  %v2758_v16 = vld [vmem:[%s3442_s4 + $0x28] sm:$0xff]   ;;  %v2759_v17 = vld [vmem:[%s3442_s4 + $0x38] sm:$0xff]   ;;  %v2760_v19 = vld [vmem:[%s3442_s4 + $0x20] sm:$0xff]  }
  0x25   : > { %2512 = vmatpush3.bf16.msra.mxu1 %v2749_v4  ;;  %2517 = vmatprep.subr.bf16.mxu0 %v2876_v1  ;;  %v2761_v20 = vld [vmem:[%s3442_s4 + $0x30] sm:$0xff]   ;;  %v2766_v25 = vld [vmem:[%s3404_s6 + $0x28] sm:$0xff]   ;;  %v2767_v26 = vld [vmem:[%s3404_s6 + $0x20] sm:$0xff]  }
  0x26   : > { %2525 = vmatprep.subr.bf16.mxu1 %v2876_v1  ;;  %v2768_v27 = vld [vmem:[%s3404_s6 + $0x38] sm:$0xff]   ;;  %v2769_v28 = vld [vmem:[%s3404_s6 + $0x30] sm:$0xff]   ;;  %v2370_v45 = vld [vmem:[%s3443_s5] ss:$0 sm:$0xff] }
  0x27   : > { %2506 = vmatmul.mubr.msk.bf16.vlgmr.msra.gmra.mxu0 %vm674_vm1, %v616_v8  ;;  %s612_s27 = scalar_lea.vmem %s3441_s22, %s2352_s21  ;;  %v2371_v46 = vld [vmem:[%s3443_s5 + $0x1] ss:$0 sm:$0xff]  ;;  %v2354_v55 = vld [vmem:[%s3444_s3] ss:$0 sm:$0xff]  ;;  %v2372_v63 = vld [vmem:[%s3443_s5 + $0x2] ss:$0 sm:$0xff] }
  0x28   : > { %2514 = vmatmul.mubr.msk.bf16.vlgmr.msra.gmra.mxu1 %vm674_vm1, %v616_v8  ;;  %2518 = vmatpush3.bf16.msra.mxu0 %v2750_v5  ;;  %v615_v13 = vld [vmem:[%s612_s27] sm:$0xff]  ;;  %s2351_s22 = sshll.u32 %s599_s23, 3 }
  0x29   : > { %2526 = vmatpush3.bf16.msra.mxu1 %v2751_v7  ;;  %2519 = vmatprep.subr.bf16.mxu0 %v2876_v1  ;;  %v617_v18 = vpack.c.bf16 %v615_v13, %v615_v13  ;;  %v2355_v56 = vld [vmem:[%s3444_s3 + $0x1] ss:$0 sm:$0xff]  ;;  %v2373_v0 = vld [vmem:[%s3443_s5 + $0x3] ss:$0 sm:$0xff]  ;;  %s601_s0 = scalar_lea.vmem [#allocation2], %s2351_s22  ;;  %s2249_s5 = scalar_lea.sflag [#allocation3], %s599_s23 }
  0x2a   : > { %2527 = vmatprep.subr.bf16.mxu1 %v2876_v1  ;;  %2521 = vmatprep.mubr.msk.bf16.mxu0 %vm2877_vm0, %v2876_v1  ;;  %s2263_s21 = sshll.u32 %s601_s0, 4  ;;  %s2264_s21 = int_to_ptr.vmem [resolvable:$true] %s2263_s21 }
  0x2b   : > { %2529 = vmatprep.mubr.msk.bf16.mxu1 %vm2877_vm0, %v2876_v1  ;;  %s2798_s27 = scalar_lea.vmem %s2264_s21, 128  ;;  %p2805_p1 = scmp.lt.s32.totalorder %s2264_s21, %s2803_s1 }
  0x2c   : > { %2520 = vmatpush3.bf16.msra.mxu0 %v2752_v9  ;;  %p2799_p12 = scmp.ne.s32.totalorder %s2264_s21, %s2798_s27  ;;  %p2806_p2 = scmp.lt.s32.totalorder %s2804_s30, %s2798_s27 }
  0x2d   : > { %2528 = vmatpush3.bf16.msra.mxu1 %v2753_v10  ;;  %2533 = vmatprep.subr.bf16.mxu0 %v2876_v1 }
  0x2e   : > { %2541 = vmatprep.subr.bf16.mxu1 %v2876_v1  ;;  %p2800_p13 = pnand %p2799_p12, %p3014_p4  ;;  %p2807_p3 = por %p2806_p2, %p2805_p1 }
  0x2f   : > { %2522 = vmatmul.mubr.msk.bf16.vlgmr.msra.gmra.mxu0 %vm674_vm1, %v616_v8 }
  0x30   : > { %2530 = vmatmul.mubr.msk.bf16.vlgmr.msra.gmra.mxu1 %vm674_vm1, %v616_v8  ;;  %2534 = vmatpush3.bf16.msra.mxu0 %v2754_v11  ;;  %p2801_p0 = pneg %p2800_p13 }
  0x31   : > { %2542 = vmatpush3.bf16.msra.mxu1 %v2755_v12  ;;  %2535 = vmatprep.subr.bf16.mxu0 %v2876_v1 }
  0x32   : > { %2543 = vmatprep.subr.bf16.mxu1 %v2876_v1  ;;  %2537 = vmatprep.mubr.msk.bf16.mxu0 %vm2877_vm0, %v2876_v1  ;;  %p2808_p5 = pnand %p2807_p3, %p2801_p0 }
  0x33   : > { %2545 = vmatprep.mubr.msk.bf16.mxu1 %vm2877_vm0, %v2876_v1 }
  0x34   : > { %2536 = vmatpush3.bf16.msra.mxu0 %v2756_v14 }
  0x35   : > { %2544 = vmatpush3.bf16.msra.mxu1 %v2757_v15  ;;  %2549 = vmatprep.subr.bf16.mxu0 %v2876_v1  ;;  %v2356_v15 = vld [vmem:[%s3444_s3 + $0x2] ss:$0 sm:$0xff] }
  0x36   : > { %2557 = vmatprep.subr.bf16.mxu1 %v2876_v1 }
  0x37   : > { %2538 = vmatmul.mubr.msk.bf16.vlgmr.msra.gmra.mxu0 %vm674_vm1, %v617_v18 }
  0x38   : > { %2546 = vmatmul.mubr.msk.bf16.vlgmr.msra.gmra.mxu1 %vm674_vm1, %v617_v18  ;;  %2550 = vmatpush3.bf16.msra.mxu0 %v2758_v16  ;;  %v2357_v16 = vld [vmem:[%s3444_s3 + $0x3] ss:$0 sm:$0xff]  ;;  %s3445_s3 = sld [smem:[#allocation16_spill]] }
  0x39   : > { %2558 = vmatpush3.bf16.msra.mxu1 %v2759_v17  ;;  %2551 = vmatprep.subr.bf16.mxu0 %v2876_v1 }
  0x3a   : > { %2559 = vmatprep.subr.bf16.mxu1 %v2876_v1  ;;  %2553 = vmatprep.mubr.msk.bf16.mxu0 %vm2877_vm0, %v2876_v1 }
  0x3b   : > { %2561 = vmatprep.mubr.msk.bf16.mxu1 %vm2877_vm0, %v2876_v1 }
  0x3c   : > { %2552 = vmatpush3.bf16.msra.mxu0 %v2760_v19 }
  0x3d   : > { %2560 = vmatpush3.bf16.msra.mxu1 %v2761_v20  ;;  %2565 = vmatprep.subr.bf16.mxu0 %v2876_v1 }
  0x3e   : > { %2573 = vmatprep.subr.bf16.mxu1 %v2876_v1  ;;  %s2261_s4 = scalar_lea.hbm %s3445_s3, %s2430_s29 }
  0x3f   : > { %2554 = vmatmul.mubr.msk.bf16.vlgmr.msra.gmra.mxu0 %vm674_vm1, %v617_v18 }
  0x40   : > { %2562 = vmatmul.mubr.msk.bf16.vlgmr.msra.gmra.mxu1 %vm674_vm1, %v617_v18  ;;  %2569 = vmatprep.mubr.msk.bf16.mxu0 %vm2877_vm0, %v2876_v1 }
  0x41   : > { %2577 = vmatprep.mubr.msk.bf16.mxu1 %vm2877_vm0, %v2876_v1  ;;  %2566 = vmatpush3.bf16.msra.mxu0 %v2762_v21 }
  0x42   : > { %2567 = vmatprep.subr.bf16.mxu0 %v2876_v1  ;;  %2574 = vmatpush3.bf16.msra.mxu1 %v2764_v23 }
  0x43   : > { %2575 = vmatprep.subr.bf16.mxu1 %v2876_v1 }
  0x45   : > { %2568 = vmatpush3.bf16.msra.mxu0 %v2763_v22 }
  0x46   : > { %2581 = vmatprep.subr.bf16.mxu0 %v2876_v1  ;;  %2576 = vmatpush3.bf16.msra.mxu1 %v2765_v24 }
  0x47   : > { %2589 = vmatprep.subr.bf16.mxu1 %v2876_v1 }
  0x48   : > { %2570 = vmatmul.mubr.msk.bf16.vlgmr.msra.gmra.mxu0 %vm674_vm1, %v617_v18 }
  0x49   : > { %2582 = vmatpush3.bf16.msra.mxu0 %v2766_v25  ;;  %2585 = vmatprep.mubr.msk.bf16.mxu0 %vm2877_vm0, %v2876_v1 }
  0x4a   : > { %2583 = vmatprep.subr.bf16.mxu0 %v2876_v1  ;;  %2578 = vmatmul.mubr.msk.bf16.vlgmr.msra.gmra.mxu1 %vm674_vm1, %v617_v18 }
  0x4b   : > { %2590 = vmatpush3.bf16.msra.mxu1 %v2768_v27  ;;  %2593 = vmatprep.mubr.msk.bf16.mxu1 %vm2877_vm0, %v2876_v1  ;;  %v2386_v27 = vld [vmem:[%s3405_s7] ss:$0 sm:$0xff] }
  0x4c   : > { %2591 = vmatprep.subr.bf16.mxu1 %v2876_v1 }
  0x4d   : > { %2584 = vmatpush3.bf16.msra.mxu0 %v2767_v26 }
  0x4e   : > { %2597 = vmatprep.subr.bf16.mxu0 %v2876_v1 }
  0x4f   : > { %2592 = vmatpush3.bf16.msra.mxu1 %v2769_v28 }
  0x50   : > { %2586 = vmatmul.mubr.msk.bf16.vlgmr.msra.gmra.mxu0 %vm674_vm1, %v617_v18  ;;  %2603 = vmatprep.subr.bf16.mxu1 %v2876_v1 }
  0x51   : > { %2599 = vmatprep.mubr.msk.bf16.mxu0 %vm2877_vm0, %v2876_v1 }
  0x52   : > { %2594 = vmatmul.mubr.msk.bf16.vlgmr.msra.gmra.mxu1 %vm674_vm1, %v617_v18 }
  0x53   : > { %2605 = vmatprep.mubr.msk.bf16.mxu1 %vm2877_vm0, %v2876_v1 }
  0xe7   : > { %v712_v29 = vpop.f32.mrf.mxu0 }
  0xe8   : > { %v764_v30 = vpop.f32.mrf.mxu1  ;;  %v713_v2 = vadd.f32 %v2354_v55, %v712_v29 }
  0xe9   : > { %v2507_v31 = vpop.f32.mrf.mxu0  ;;  %v765_v3 = vadd.f32 %v2355_v56, %v764_v30 }
  0xea   : > { %v2515_v32 = vpop.f32.mrf.mxu1  ;;  %v1381_v11 = vpack.c.bf16 %v713_v2, %v713_v2  ;;  %v2387_v31 = vld [vmem:[%s3405_s7 + $0x1] ss:$0 sm:$0xff] }
  0xeb   : > { %v715_v33 = vpop.f32.mrf.mxu0  ;;  %v1382_v12 = vpack.c.bf16 %v765_v3, %v765_v3 }
  0xec   : > { %v767_v34 = vpop.f32.mrf.mxu1 }
  0xed   : > { %v2508_v35 = vpop.f32.mrf.mxu0 }
  0xee   : > { %v2516_v36 = vpop.f32.mrf.mxu1 }
  0xef   : > { %v816_v37 = vpop.f32.mrf.mxu0 }
  0xf0   : > { %v868_v38 = vpop.f32.mrf.mxu1  ;;  %v817_v23 = vadd.f32 %v2356_v15, %v816_v37 }
  0xf1   : > { %v2523_v39 = vpop.f32.mrf.mxu0  ;;  %v869_v24 = vadd.f32 %v2357_v16, %v868_v38 }
  0xf2   : > { %v2531_v40 = vpop.f32.mrf.mxu1  ;;  %v1383_v25 = vpack.c.bf16 %v817_v23, %v817_v23 }
  0xf3   : > { %v819_v41 = vpop.f32.mrf.mxu0  ;;  %v1384_v26 = vpack.c.bf16 %v869_v24, %v869_v24 }
  0xf4   : > { %v871_v42 = vpop.f32.mrf.mxu1 }
  0xf5   : > { %v2524_v43 = vpop.f32.mrf.mxu0 }
  0xf6   : > { %v2532_v44 = vpop.f32.mrf.mxu1 }
  0xf7   : > { %v967_v47 = vpop.f32.mrf.mxu0 }
  0xf8   : > { %v1019_v48 = vpop.f32.mrf.mxu1  ;;  %v968_v49 = vadd.f32 %v2370_v45, %v967_v47 }
  0xf9   : > { %v1020_v50 = vadd.f32 %v2371_v46, %v1019_v48  ;;  %v2539_v51 = vpop.f32.mrf.mxu0 }
  0xfa   : > { %v2547_v52 = vpop.f32.mrf.mxu1  ;;  %v1385_v53 = vpack.c.bf16 %v968_v49, %v968_v49  ;;  %v1575_v51 = vlaneseq }
  0xfb   : > { %v1386_v54 = vpack.c.bf16 %v1020_v50, %v1020_v50  ;;  %v970_v57 = vpop.f32.mrf.mxu0 }
  0xfc   : > { %v1022_v58 = vpop.f32.mrf.mxu1  ;;  %v1394_v59 = vsel %vm1389_vm2, %v1385_v53, 0  ;;  %v1576_v52 = vshrl.u32 %v1575_v51, 7  ;;  %v1580_v53 = vand.u32 127, %v1575_v51 }
  0xfd   : > { %v1440_v60 = vsel %vm1389_vm2, %v1386_v54, 0  ;;  %v2540_v61 = vpop.f32.mrf.mxu0  ;;  %2598 = vmatpush3.bf16.xpose.msra.mxu0 %v1394_v59 }
  0xfe   : > { %v2548_v62 = vpop.f32.mrf.mxu1  ;;  %2604 = vmatpush3.bf16.xpose.msra.mxu1 %v1440_v60  ;;  %2609 = vmatprep.subr.bf16.mxu0 %v2876_v1  ;;  %vm1581_vm4 = vcmp.ge.s32.totalorder %v1576_v52, %v1580_v53 }
  0xff   : > { %2615 = vmatprep.subr.bf16.mxu1 %v2876_v1  ;;  %v1071_v4 = vpop.f32.mrf.mxu0 }
 0x100   : > { %v1123_v5 = vpop.f32.mrf.mxu1  ;;  %v1072_v7 = vadd.f32 %v2372_v63, %v1071_v4 }
 0x101   : > { %v1124_v8 = vadd.f32 %v2373_v0, %v1123_v5  ;;  %v2555_v9 = vpop.f32.mrf.mxu0 }
 0x102   : > { %v2563_v10 = vpop.f32.mrf.mxu1  ;;  %v1387_v13 = vpack.c.bf16 %v1072_v7, %v1072_v7 }
 0x103   : > { %v1388_v14 = vpack.c.bf16 %v1124_v8, %v1124_v8  ;;  %v1074_v17 = vpop.f32.mrf.mxu0 }
 0x104   : > { %v1126_v18 = vpop.f32.mrf.mxu1  ;;  %v1486_v19 = vsel %vm1389_vm2, %v1387_v13, 0  ;;  %2600 = vmatmul.mubr.msk.bf16.vlgmr.msra.gmra.mxu0 %vm1389_vm2, %v1381_v11 }
 0x105   : > { %v1532_v20 = vsel %vm1389_vm2, %v1388_v14, 0  ;;  %2606 = vmatmul.mubr.msk.bf16.vlgmr.msra.gmra.mxu1 %vm1389_vm2, %v1382_v12  ;;  %v2556_v21 = vpop.f32.mrf.mxu0  ;;  %2610 = vmatpush3.bf16.xpose.msra.mxu0 %v1486_v19 }
 0x106   : > { %v2564_v22 = vpop.f32.mrf.mxu1  ;;  %2616 = vmatpush3.bf16.xpose.msra.mxu1 %v1532_v20  ;;  %2611 = vmatprep.mubr.msk.bf16.mxu0 %vm2877_vm0, %v2876_v1 }
 0x107   : > { %2617 = vmatprep.mubr.msk.bf16.mxu1 %vm2877_vm0, %v2876_v1  ;;  %2621 = vmatprep.subr.bf16.mxu0 %v2876_v1 }
 0x108   : > { %2627 = vmatprep.subr.bf16.mxu1 %v2876_v1  ;;  %v1219_v28 = vpop.f32.mrf.mxu0 }
 0x109   : > { %v1220_v29 = vadd.f32 %v2386_v27, %v1219_v28 }
 0x10a   : > { %v2571_v30 = vpop.f32.mrf.mxu0  ;;  %v1271_v34 = vpop.f32.mrf.mxu1 }
 0x10b   : > { %v1634_v32 = vpack.c.bf16 %v1220_v29, %v1220_v29  ;;  %v1272_v36 = vadd.f32 %v2387_v31, %v1271_v34 }
 0x10c   : > { %2612 = vmatmul.mubr.msk.bf16.vlgmr.msra.gmra.mxu0 %vm1389_vm2, %v1383_v25  ;;  %v1222_v33 = vpop.f32.mrf.mxu0  ;;  %v2579_v38 = vpop.f32.mrf.mxu1 }
 0x10d   : > { %2618 = vmatmul.mubr.msk.bf16.vlgmr.msra.gmra.mxu1 %vm1389_vm2, %v1384_v26  ;;  %2623 = vmatprep.mubr.msk.bf16.mxu0 %vm2877_vm0, %v2876_v1  ;;  %v1643_v35 = vsel %vm1641_vm3, %v1634_v32, 0  ;;  %v1635_v39 = vpack.c.bf16 %v1272_v36, %v1272_v36  ;;  %v2388_v38 = vld [vmem:[%s3405_s7 + $0x2] ss:$0 sm:$0xff] }
 0x10e   : > { %2629 = vmatprep.mubr.msk.bf16.mxu1 %vm2877_vm0, %v2876_v1  ;;  %v2572_v37 = vpop.f32.mrf.mxu0  ;;  %2622 = vmatpush3.bf16.msra.mxu0 %v1643_v35  ;;  %v1274_v40 = vpop.f32.mrf.mxu1 }
 0x10f   : > { %2633 = vmatprep.subr.bf16.mxu0 %v2876_v1  ;;  %v1689_v42 = vsel %vm1641_vm3, %v1635_v39, 0 }
 0x110   : > { %v3231_v41 = vpop.f32.mrf.mxu0  ;;  %v2580_v43 = vpop.f32.mrf.mxu1  ;;  %2628 = vmatpush3.bf16.msra.mxu1 %v1689_v42  ;;  %v2389_v42 = vld [vmem:[%s3405_s7 + $0x3] ss:$0 sm:$0xff] }
 0x111   : > { %2639 = vmatprep.subr.bf16.mxu1 %v2876_v1  ;;  %v1324_v40 = vadd.f32 %v2388_v38, %v3231_v41 }
 0x112   : > { %v2587_v44 = vpop.f32.mrf.mxu0  ;;  %v3235_v46 = vpop.f32.mrf.mxu1 }
 0x114   : > { %v1326_v45 = vpop.f32.mrf.mxu0  ;;  %v2595_v48 = vpop.f32.mrf.mxu1 }
 0x115   : > { %v1636_v45 = vpack.c.bf16 %v1324_v40, %v1324_v40 }
 0x116   : > { %v2588_v47 = vpop.f32.mrf.mxu0  ;;  %v1378_v49 = vpop.f32.mrf.mxu1 }
 0x117   : > { %v1376_v47 = vadd.f32 %v2389_v42, %v3235_v46  ;;  %v1735_v51 = vsel %vm1641_vm3, %v1636_v45, 0  ;;  %v1827_v46 = vld [vmem:[%s3406_s8] sm:$0xf] }
 0x118   : > { %v2596_v50 = vpop.f32.mrf.mxu1  ;;  %v2414_v45 = vld [vmem:[%s3407_s9] ss:$0 sm:$0xff] }
 0x119   : > { %v1637_v52 = vpack.c.bf16 %v1376_v47, %v1376_v47 }
 0x1c4   : > { %v1430_v54 = vpop.f32.mrf.mxu0 }
 0x1c5   : > { %v1476_v55 = vpop.f32.mrf.mxu1  ;;  %v1582_v56 = vsel %vm1581_vm4, %v1430_v54, -inf }
 0x1c6   : > { %v2601_v57 = vpop.f32.mrf.mxu0  ;;  %v1586_v59 = vsel %vm1389_vm2, %v1582_v56, -inf  ;;  %v1583_v60 = vsel %vm1581_vm4, %v1476_v55, -inf  ;;  %v1781_v55 = vsel %vm1641_vm3, %v1637_v52, 0 }
 0x1c7   : > { %v2607_v58 = vpop.f32.mrf.mxu1  ;;  %1587 = vmax.xlane.f32.xlu0 %v1586_v59  ;;  %v1589_v2 = vsel %vm1389_vm2, %v1583_v60, -inf }
 0x1c8   : > { %v1433_v61 = vpop.f32.mrf.mxu0  ;;  %v1835_v58 = vsel %vm1641_vm3, %v1827_v46, 0 }
 0x1c9   : > { %v1479_v62 = vpop.f32.mrf.mxu1 }
 0x1ca   : > { %v2602_v63 = vpop.f32.mrf.mxu0  ;;  %v1828_v62 = vld [vmem:[%s3406_s8 + $0x4] sm:$0xf] }
 0x1cb   : > { %v2608_v0 = vpop.f32.mrf.mxu1  ;;  %1590 = vmax.xlane.f32.xlu0 %v1589_v2  ;;  %v1881_v63 = vsel %vm1641_vm3, %v1828_v62, 0 }
 0x1cc   : > { %v1522_v3 = vpop.f32.mrf.mxu0  ;;  %v1829_v0 = vld [vmem:[%s3406_s8 + $0x8] sm:$0xf] }
 0x1cd   : > { %v1568_v4 = vpop.f32.mrf.mxu1  ;;  %v1584_v5 = vsel %vm1581_vm4, %v1522_v3, -inf }
 0x1ce   : > { %v2613_v7 = vpop.f32.mrf.mxu0  ;;  %v1592_v9 = vsel %vm1389_vm2, %v1584_v5, -inf  ;;  %v1585_v10 = vsel %vm1581_vm4, %v1568_v4, -inf  ;;  %v1927_v4 = vsel %vm1641_vm3, %v1829_v0, 0 }
 0x1cf   : > { %v2619_v8 = vpop.f32.mrf.mxu1  ;;  %1593 = vmax.xlane.f32.xlu1 %v1592_v9  ;;  %v1595_v15 = vsel %vm1389_vm2, %v1585_v10, -inf  ;;  %v1830_v7 = vld [vmem:[%s3406_s8 + $0xc] sm:$0xf] }
 0x1d0   : > { %v1525_v11 = vpop.f32.mrf.mxu0 }
 0x1d1   : > { %v1571_v12 = vpop.f32.mrf.mxu1  ;;  %v1973_v11 = vsel %vm1641_vm3, %v1830_v7, 0  ;;  %v2772_v7 = vld [vmem:[%s3410_s12 + $0x18] sm:$0xff]  }
 0x1d2   : > { %v2614_v13 = vpop.f32.mrf.mxu0 }
 0x1d3   : > { %v2620_v14 = vpop.f32.mrf.mxu1  ;;  %1596 = vmax.xlane.f32.xlu1 %v1595_v15 }
 0x250   : > { %v1588_v16 = vpop.xlane.xlu0 %1587 }
 0x251   : > { %v1598_v17 = vsub.f32 %v1582_v56, %v1588_v16 }
 0x253   : > { %v1602_v18 = vmul.f32 1.442695, %v1598_v17 }
 0x254   : > { %v1591_v19 = vpop.xlane.xlu0 %1590 }
 0x255   : > { %2776 = vpow2.f32 %v1602_v18  ;;  %v1599_v20 = vsub.f32 %v1583_v60, %v1591_v19 }
 0x257   : > { %v1604_v21 = vmul.f32 1.442695, %v1599_v20 }
 0x258   : > { %v1594_v22 = vpop.xlane.xlu1 %1593 }
 0x259   : > { %2778 = vpow2.f32 %v1604_v21  ;;  %v1600_v23 = vsub.f32 %v1584_v5, %v1594_v22 }
 0x25b   : > { %v1606_v24 = vmul.f32 1.442695, %v1600_v23 }
 0x25c   : > { %v1597_v25 = vpop.xlane.xlu1 %1596 }
 0x25d   : > { %2780 = vpow2.f32 %v1606_v24  ;;  %v1601_v26 = vsub.f32 %v1585_v10, %v1597_v25 }
 0x25f   : > { %v1608_v27 = vmul.f32 1.442695, %v1601_v26 }
 0x261   : > { %2782 = vpow2.f32 %v1608_v27 }
 0x262   : > { %v2777_v28 = vpop.eup %2776 }
 0x263   : > { %v1610_v29 = vsel %vm1389_vm2, %v2777_v28, 0.0 }
 0x264   : > { %1611 = vadd.xlane.f32.xlu0 %v1610_v29 }
 0x266   : > { %v2779_v30 = vpop.eup %2778 }
 0x267   : > { %v1613_v31 = vsel %vm1389_vm2, %v2779_v30, 0.0 }
 0x268   : > { %1614 = vadd.xlane.f32.xlu1 %v1613_v31 }
 0x26a   : > { %v2781_v32 = vpop.eup %2780 }
 0x26b   : > { %v1616_v33 = vsel %vm1389_vm2, %v2781_v32, 0.0 }
 0x26c   : > { %1617 = vadd.xlane.f32.xlu0 %v1616_v33 }
 0x26e   : > { %v2783_v34 = vpop.eup %2782 }
 0x26f   : > { %v1619_v35 = vsel %vm1389_vm2, %v2783_v34, 0.0 }
 0x270   : > { %1620 = vadd.xlane.f32.xlu1 %v1619_v35 }
 0x2ed   : > { %v1612_v36 = vpop.xlane.xlu0 %1611 }
 0x2ee   : > { %2784 = vrcp.f32 %v1612_v36 }
 0x2f1   : > { %v1615_v37 = vpop.xlane.xlu1 %1614 }
 0x2f2   : > { %2786 = vrcp.f32 %v1615_v37 }
 0x2f5   : > { %v1618_v39 = vpop.xlane.xlu0 %1617 }
 0x2f6   : > { %2788 = vrcp.f32 %v1618_v39 }
 0x2f9   : > { %v1621_v43 = vpop.xlane.xlu1 %1620 }
 0x2fa   : > { %2790 = vrcp.f32 %v1621_v43 }
 0x2fb   : > { %v2785_v44 = vpop.eup %2784 }
 0x2fc   : > { %v1626_v48 = vmul.f32 %v2785_v44, %v2777_v28 }
 0x2fe   : > { %v1630_v49 = vpack.c.bf16 %v1626_v48, %v1626_v48 }
 0x2ff   : > { %v2787_v50 = vpop.eup %2786 }
 0x300   : > { %2624 = vmatmul.mubr.msk.bf16.vlgmr.msra.gmra.mxu0 %vm1389_vm2, %v1630_v49  ;;  %v1627_v53 = vmul.f32 %v2787_v50, %v2779_v30 }
 0x301   : > { %2634 = vmatpush3.bf16.msra.mxu0 %v1735_v51  ;;  %2635 = vmatprep.mubr.msk.bf16.mxu0 %vm2877_vm0, %v2876_v1 }
 0x302   : > { %v1631_v41 = vpack.c.bf16 %v1627_v53, %v1627_v53  ;;  %2645 = vmatprep.subr.bf16.mxu0 %v2876_v1 }
 0x303   : > { %v2789_v54 = vpop.eup %2788 }
 0x304   : > { %2630 = vmatmul.mubr.msk.bf16.vlgmr.msra.gmra.mxu1 %vm1389_vm2, %v1631_v41  ;;  %v1628_v56 = vmul.f32 %v2789_v54, %v2781_v32 }
 0x305   : > { %2640 = vmatpush3.bf16.msra.mxu1 %v1781_v55  ;;  %2641 = vmatprep.mubr.msk.bf16.mxu1 %vm2877_vm0, %v2876_v1 }
 0x306   : > { %v1632_v57 = vpack.c.bf16 %v1628_v56, %v1628_v56  ;;  %2651 = vmatprep.subr.bf16.mxu1 %v2876_v1 }
 0x307   : > { %v2791_v59 = vpop.eup %2790 }
 0x308   : > { %2636 = vmatmul.mubr.msk.bf16.vlgmr.msra.gmra.mxu0 %vm1389_vm2, %v1632_v57  ;;  %v1629_v60 = vmul.f32 %v2791_v59, %v2783_v34  ;;  %v2771_v59 = vld [vmem:[%s3408_s10] sm:$0xff]  }
 0x309   : > { %2646 = vmatpush3.bf16.msra.mxu0 %v1835_v58  ;;  %2647 = vmatprep.mubr.msk.bf16.mxu0 %vm2877_vm0, %v2876_v1  ;;  %v2770_v58 = vld [vmem:[%s3408_s10 + $0x8] sm:$0xff]  }
 0x30a   : > { %v1633_v61 = vpack.c.bf16 %v1629_v60, %v1629_v60  ;;  %2657 = vmatprep.subr.bf16.mxu0 %v2876_v1 }
 0x30c   : > { %2642 = vmatmul.mubr.msk.bf16.vlgmr.msra.gmra.mxu1 %vm1389_vm2, %v1633_v61 }
 0x30d   : > { %2653 = vmatprep.mubr.msk.bf16.mxu1 %vm2877_vm0, %v2876_v1  ;;  %2652 = vmatpush3.bf16.msra.mxu1 %v1881_v63  ;;  %v2415_v63 = vld [vmem:[%s3412_s14] ss:$0 sm:$0xff] }
 0x30e   : > { %2663 = vmatprep.subr.bf16.mxu1 %v2876_v1 }
 0x3c0   : > { %v1679_v2 = vpop.f32.mrf.mxu0 }
 0x3c1   : > { %v1823_v3 = vpack.c.bf16 %v1679_v2, %v1679_v2  ;;  %v2416_v2 = vld [vmem:[%s3413_s15] ss:$0 sm:$0xff] }
 0x3c2   : > { %v2625_v5 = vpop.f32.mrf.mxu0 }
 0x3c3   : > { %2648 = vmatmul.mubr.msk.bf16.vlgmr.msra.gmra.mxu0 %vm1389_vm2, %v1823_v3 }
 0x3c4   : > { %v1682_v8 = vpop.f32.mrf.mxu0  ;;  %v1725_v9 = vpop.f32.mrf.mxu1  ;;  %2658 = vmatpush3.bf16.msra.mxu0 %v1927_v4  ;;  %2659 = vmatprep.mubr.msk.bf16.mxu0 %vm2877_vm0, %v2876_v1 }
 0x3c5   : > { %v1824_v10 = vpack.c.bf16 %v1725_v9, %v1725_v9  ;;  %2669 = vmatprep.subr.bf16.mxu0 %v2876_v1  ;;  %v2773_v8 = vld [vmem:[%s3410_s12 + $0x10] sm:$0xff]   ;;  %v2774_v9 = vld [vmem:[%s3410_s12 + $0x8] sm:$0xff]  }
 0x3c6   : > { %v2626_v12 = vpop.f32.mrf.mxu0  ;;  %v2631_v13 = vpop.f32.mrf.mxu1 }
 0x3c7   : > { %2654 = vmatmul.mubr.msk.bf16.vlgmr.msra.gmra.mxu1 %vm1389_vm2, %v1824_v10  ;;  %v2775_v10 = vld [vmem:[%s3410_s12] sm:$0xff]  }
 0x3c8   : > { %v1728_v14 = vpop.f32.mrf.mxu1  ;;  %v1771_v15 = vpop.f32.mrf.mxu0  ;;  %2664 = vmatpush3.bf16.msra.mxu1 %v1973_v11  ;;  %2665 = vmatprep.mubr.msk.bf16.mxu1 %vm2877_vm0, %v2876_v1  ;;  %v2417_v11 = vld [vmem:[%s3409_s11] ss:$0 sm:$0xff] }
 0x3c9   : > { %v1825_v16 = vpack.c.bf16 %v1771_v15, %v1771_v15  ;;  %2677 = vmatprep.subr.bf16.mxu1 %v2876_v1 }
 0x3ca   : > { %v2632_v17 = vpop.f32.mrf.mxu1  ;;  %v2637_v18 = vpop.f32.mrf.mxu0 }
 0x3cb   : > { %2660 = vmatmul.mubr.msk.bf16.vlgmr.msra.gmra.mxu0 %vm1389_vm2, %v1825_v16 }
 0x3cc   : > { %v1774_v19 = vpop.f32.mrf.mxu0  ;;  %v1817_v20 = vpop.f32.mrf.mxu1  ;;  %2673 = vmatprep.mubr.msk.bf16.mxu0 %vm2877_vm0, %v2876_v1  ;;  %2670 = vmatpush3.bf16.msra.mxu0 %v2770_v58 }
 0x3cd   : > { %v1826_v21 = vpack.c.bf16 %v1817_v20, %v1817_v20  ;;  %2671 = vmatprep.subr.bf16.mxu0 %v2876_v1 }
 0x3ce   : > { %v2638_v22 = vpop.f32.mrf.mxu0  ;;  %v2643_v23 = vpop.f32.mrf.mxu1 }
 0x3cf   : > { %2666 = vmatmul.mubr.msk.bf16.vlgmr.msra.gmra.mxu1 %vm1389_vm2, %v1826_v21  ;;  %v2421_v22 = vld [vmem:[%s3411_s13] ss:$0 sm:$0xff] }
 0x3d0   : > { %v1820_v24 = vpop.f32.mrf.mxu1  ;;  %2685 = vmatprep.mubr.msk.bf16.mxu1 %vm2877_vm0, %v2876_v1  ;;  %2672 = vmatpush3.bf16.msra.mxu0 %v2771_v59 }
 0x3d1   : > { %2678 = vmatpush3.bf16.msra.mxu1 %v2772_v7 }
 0x3d2   : > { %v2644_v25 = vpop.f32.mrf.mxu1  ;;  %2679 = vmatprep.subr.bf16.mxu1 %v2876_v1 }
 0x3d5   : > { %2680 = vmatpush3.bf16.msra.mxu1 %v2773_v8 }
 0x3d6   : > { %2681 = vmatprep.subr.bf16.mxu1 %v2876_v1 }
 0x3d9   : > { %2682 = vmatpush3.bf16.msra.mxu1 %v2774_v9 }
 0x3da   : > { %2683 = vmatprep.subr.bf16.mxu1 %v2876_v1 }
 0x3dd   : > { %2684 = vmatpush3.bf16.msra.mxu1 %v2775_v10 }
 0x483   : > { %v1871_v26 = vpop.f32.mrf.mxu0 }
 0x484   : > { %v2015_v35 = vsel %vm674_vm1, %v1871_v26, 0.0 }
 0x485   : > { %v2649_v27 = vpop.f32.mrf.mxu0 }
 0x487   : > { %v1874_v28 = vpop.f32.mrf.mxu0  ;;  %v1917_v29 = vpop.f32.mrf.mxu1 }
 0x488   : > { %v2016_v32 = vsel %vm674_vm1, %v1917_v29, 0.0 }
 0x489   : > { %v2650_v30 = vpop.f32.mrf.mxu0  ;;  %v2655_v31 = vpop.f32.mrf.mxu1  ;;  %v2017_v37 = vadd.f32 %v2016_v32, %v2015_v35 }
 0x48b   : > { %v1920_v33 = vpop.f32.mrf.mxu1  ;;  %v1963_v34 = vpop.f32.mrf.mxu0 }
 0x48c   : > { %v2018_v36 = vsel %vm674_vm1, %v1963_v34, 0.0 }
 0x48d   : > { %v2656_v38 = vpop.f32.mrf.mxu1  ;;  %v2661_v39 = vpop.f32.mrf.mxu0  ;;  %v2019_v40 = vadd.f32 %v2018_v36, %v2017_v37 }
 0x48e   : > { %v2427_v39 = vld [vmem:[%s3414_s16] ss:$0 sm:$0xff] }
 0x48f   : > { %v1966_v42 = vpop.f32.mrf.mxu0  ;;  %v2009_v43 = vpop.f32.mrf.mxu1 }
 0x490   : > { %v2020_v44 = vsel %vm674_vm1, %v2009_v43, 0.0  ;;  %v2428_v42 = vld [vmem:[%s3415_s17] ss:$0 sm:$0xff] }
 0x491   : > { %v2021_v47 = vadd.f32 %v2020_v44, %v2019_v40  ;;  %v2662_v48 = vpop.f32.mrf.mxu0  ;;  %v2667_v49 = vpop.f32.mrf.mxu1 }
 0x493   : > { %v2029_v50 = vadd.f32 %v2414_v45, %v2021_v47  ;;  %v2012_v51 = vpop.f32.mrf.mxu1 }
 0x495   : > { %v2668_v52 = vpop.f32.mrf.mxu1  ;;  %v2030_v53 = vadd.f32 %v2029_v50, %v3058_v6 }
 0x497   : > { %v2031_v41 = vsel %vm674_vm1, %v2030_v53, 0.0 }
 0x498   : > { %2032 = vadd.xlane.f32.xlu0 %v2031_v41 }
 0x521   : > { %v2033_v54 = vpop.xlane.xlu0 %2032 }
 0x522   : > { %v2035_v46 = vmul.f32 0.03125, %v2033_v54 }
 0x524   : > { %v2036_v55 = vsub.f32 %v2030_v53, %v2035_v46 }
 0x526   : > { %v2037_v56 = vmul.f32 %v2036_v55, %v2036_v55 }
 0x528   : > { %v2038_v57 = vsel %vm674_vm1, %v2037_v56, 0.0 }
 0x529   : > { %2039 = vadd.xlane.f32.xlu1 %v2038_v57 }
 0x5b2   : > { %v2040_v6 = vpop.xlane.xlu1 %2039 }
 0x5b3   : > { %v2041_v60 = vmul.f32 0.03125, %v2040_v6 }
 0x5b5   : > { %v2042_v61 = vadd.f32 1e-05, %v2041_v60 }
 0x5b7   : > { %2792 = vrsqrt.f32 %v2042_v61 }
 0x5c4   : > { %v2793_v62 = vpop.eup %2792 }
 0x5c5   : > { %v2044_v0 = vmul.f32 %v2793_v62, %v2036_v55 }
 0x5c7   : > { %v2052_v3 = vmul.f32 %v2415_v63, %v2044_v0 }
 0x5c9   : > { %v2060_v4 = vadd.f32 %v2416_v2, %v2052_v3 }
 0x5cb   : > { %v2061_v5 = vpack.c.bf16 %v2060_v4, %v2060_v4 }
 0x5cd   : > { %2674 = vmatmul.mubr.msk.bf16.vlgmr.msra.gmra.mxu0 %vm674_vm1, %v2061_v5 }
 0x68d   : > { %v2122_v12 = vpop.f32.mrf.mxu0 }
 0x68e   : > { %v2123_v13 = vadd.f32 %v2417_v11, %v2122_v12 }
 0x68f   : > { %v2675_v14 = vpop.f32.mrf.mxu0 }
 0x690   : > { %v2129_v15 = vmul.f32 0.70710677, %v2123_v13  ;;  %v2128_v19 = vmul.f32 0.5, %v2123_v13 }
 0x691   : > { %v2125_v16 = vpop.f32.mrf.mxu0 }
 0x692   : > { %2794 = verf.f32 %v2129_v15 }
 0x693   : > { %v2676_v17 = vpop.f32.mrf.mxu0 }
 0x69f   : > { %v2795_v18 = vpop.eup %2794 }
 0x6a0   : > { %v2131_v20 = vadd.f32 1.0, %v2795_v18 }
 0x6a2   : > { %v2132_v1 = vmul.f32 %v2131_v20, %v2128_v19 }
 0x6a4   : > { %v2133_v21 = vpack.c.bf16 %v2132_v1, %v2132_v1 }
 0x6a6   : > { %2686 = vmatmul.mubr.msk.bf16.vlgmr.msra.gmra.mxu1 %vm2173_vm5, %v2133_v21 }
 0x766   : > { %v2211_v23 = vpop.f32.mrf.mxu1 }
 0x767   : > { %v2212_v24 = vadd.f32 %v2421_v22, %v2211_v23 }
 0x768   : > { %v2687_v25 = vpop.f32.mrf.mxu1 }
 0x769   : > { %v2217_v26 = vadd.f32 %v2212_v24, %v2060_v4 }
 0x76a   : > { %v2214_v27 = vpop.f32.mrf.mxu1 }
 0x76b   : > { %v2218_v28 = vsel %vm674_vm1, %v2217_v26, 0.0 }
 0x76c   : > { %2219 = vadd.xlane.f32.xlu0 %v2218_v28  ;;  %v2688_v29 = vpop.f32.mrf.mxu1 }
 0x7f5   : > { %v2220_v30 = vpop.xlane.xlu0 %2219 }
 0x7f6   : > { %v2221_v31 = vmul.f32 0.03125, %v2220_v30 }
 0x7f8   : > { %v2222_v32 = vsub.f32 %v2217_v26, %v2221_v31 }
 0x7fa   : > { %v2223_v33 = vmul.f32 %v2222_v32, %v2222_v32 }
 0x7fc   : > { %v2224_v34 = vsel %vm674_vm1, %v2223_v33, 0.0 }
 0x7fd   : > { %2225 = vadd.xlane.f32.xlu1 %v2224_v34 }
 0x886   : > { %v2226_v35 = vpop.xlane.xlu1 %2225 }
 0x887   : > { %v2227_v36 = vmul.f32 0.03125, %v2226_v35 }
 0x889   : > { %v2228_v37 = vadd.f32 1e-05, %v2227_v36 }
 0x88b   : > { %2796 = vrsqrt.f32 %v2228_v37 }
 0x898   : > { %v2797_v38 = vpop.eup %2796 }
 0x899   : > { %v2230_v40 = vmul.f32 %v2797_v38, %v2222_v32 }
 0x89b   : > { %v2238_v43 = vmul.f32 %v2427_v39, %v2230_v40 }
 0x89d   : > { %v2246_v44 = vadd.f32 %v2428_v42, %v2238_v43 }
 0x89f   : > { %2247 = vst.msk [vmem:[%s601_s0] sm:$0xff] %vm674_vm1, %v2246_v44 }
 0x8a0   : > { %2811 = shalt.err (!%p2808_p5)
}
 0x8a1   : > { %s2812_s22 = scalar_lea.hbm %s2261_s4, 128  ;;  %s2816_s29 = scalar_lea.hbm %s3445_s3, 256 }
 0x8a2   : > { %p2813_p6 = scmp.ne.s32.totalorder %s2261_s4, %s2812_s22  ;;  %p2817_p10 = scmp.lt.s32.totalorder %s2261_s4, %s3445_s3 }
 0x8a3   : > { %p2818_p11 = scmp.lt.s32.totalorder %s2816_s29, %s2812_s22 }
 0x8a4   : > { %p2814_p7 = pnand %p2813_p6, %p3014_p4 }
 0x8a5   : > { %p2819_p12 = por %p2818_p11, %p2817_p10 }
 0x8a6   : > { %p2815_p9 = pneg %p2814_p7 }
 0x8a8   : > { %p2820_p13 = pnand %p2819_p12, %p2815_p9 }
 0x8aa   : > { %2823 = shalt.err (!%p2820_p13)
}
 0x8ab   : > { %2689 = dma.vmem_to_hbm [thread:$0]  (%p3014_p4), %s2264_s21, 128, %s2261_s4, %s2249_s5  }
 0x8ac PF: > { %s3446_s18 = sld [smem:[#allocation5_spill]]  ;;  %p2695_p0 = scmp.ge.s32.totalorder %s2874_s19, 2 }
 0x8ae   : > { %p2692_p1 = pnand %p2695_p0, %p3021_p8 }
 0x8b0   : > { %p2693_p2 = pneg %p2692_p1 }
 0x8b2   : > { %s2275_s27 = sand.u32 1, %s3446_s18  }
 0x8b3   : > { %s2276_s26 = scalar_lea.sflag [#allocation3], %s2275_s27 }
 0x8b4   : > { %2849 = dma.done.wait (%p2693_p2), %s2276_s26, 128  }
 0x8b5   : > { %2851 = vsyncadd (%p2693_p2), %s2276_s26, 4294967168  ;;  %s31_s19 = sadd.s32 1, %s2874_s19   ;;  %s3447_s1 = sld [smem:[#allocation6_spill]] }
 0x8b6   : > { %p28_p3 = scmp.ge.s32.totalorder %s31_s19, 4   ;;  %s3448_s29 = sld [smem:[#allocation9_spill]] }
 0x8b7   : > { %s3449_s30 = sld [smem:[#allocation7_spill]]  ;;  %s3451_s27 = smov %s2858_s28 }
 0x8b8   : > { %s3450_s0 = sld [smem:[#allocation8_spill]]  ;;  %30 = sbr.rel (!%p28_p3) target bundleno = 12 (0xc), region = 130 }
 0x8bb   : > { %s3452_s28 = smov %s3447_s1 }
 0x8bd   :  { %2281 = vsyncpa [#allocation3], 1 }
 0x8be   :  { %2283 = vsyncpa [#allocation3 + $0x1], 1 }

</bundles_post_ra>
